<compile_context>
chip_gen: v7x
topology: tpu7x:2x2x1
jax: 0.10.0
libtpu: 0.0.40
codegen_flags: <defaults>
</compile_context>

<pallas_src>
import functools
import math

import jax
import jax.numpy as jnp
from jax.experimental import pallas as pl
from jax.experimental.pallas import tpu as pltpu

# ---- module hyper-parameters (small, consistent with the PyTorch module) ----
DIM = 32                         # model dim
HEADS = 4                        # number of heads
DIM_HEAD = 8                     # per-head dim
INNER = HEADS * DIM_HEAD         # 32
SCALE = DIM_HEAD ** (-0.5)
LN_EPS = 1e-5                    # nn.LayerNorm default eps


def _prenorm_attn_kernel(x_ref, g_ref, b_ref, wqkv_ref, wout_ref, o_ref, *, bt, n):
    # x_ref : (bt*n, DIM)   rows of `bt` batch elements, flattened
    # g_ref, b_ref : (1, DIM) f32
    # wqkv_ref : (DIM, 3*INNER)  (Q columns pre-scaled by 1/sqrt(d))
    # wout_ref : (INNER, DIM)
    # o_ref : (bt*n, DIM)
    rows = bt * n
    x = x_ref[...].astype(jnp.float32)                       # (R, DIM)

    # ---- LayerNorm over the feature dim (nn.LayerNorm, eps=1e-5) ----
    # f32 VPU/EUP math on all generations (v5e has no bf16 VPU/EUP).
    mean = jnp.mean(x, axis=-1, keepdims=True)
    xc = x - mean
    var = jnp.mean(xc * xc, axis=-1, keepdims=True)
    x_ln = (xc * jax.lax.rsqrt(var + LN_EPS) * g_ref[...].astype(jnp.float32)
            + b_ref[...].astype(jnp.float32))

    mm_dtype = wqkv_ref.dtype   # MXU operand dtype (f32 default, bf16 optional)

    # ---- QKV projection: one matmul over all rows in the block ----
    qkv = jnp.dot(x_ln.astype(mm_dtype), wqkv_ref[...],
                  preferred_element_type=jnp.float32)        # (R, 3*INNER)

    # ---- attention: per head (4 static iters), batched over all bt elements ----
    head_outs = []
    for h in range(HEADS):
        c0 = h * DIM_HEAD
        q_h = qkv[:, c0:c0 + DIM_HEAD].reshape(bt, n, DIM_HEAD)
        k_h = qkv[:, INNER + c0:INNER + c0 + DIM_HEAD].reshape(bt, n, DIM_HEAD)
        v_h = qkv[:, 2 * INNER + c0:2 * INNER + c0 + DIM_HEAD].reshape(bt, n, DIM_HEAD)

        # dots[g] = q_g @ k_g^T for all batch elements at once (batch dim 0).
        dots = jax.lax.dot_general(
            q_h, k_h, (((2,), (2,)), ((0,), (0,))),
            preferred_element_type=jnp.float32)              # (bt, n, n)

        # numerically-stable softmax; reciprocal goes to the EUP slot
        dots = dots - jnp.max(dots, axis=-1, keepdims=True)
        e = jnp.exp(dots)
        inv = pl.reciprocal(jnp.sum(e, axis=-1, keepdims=True), approx=True)
        attn = e * inv

        out_h = jax.lax.dot_general(
            attn.astype(mm_dtype), v_h.astype(mm_dtype),
            (((2,), (1,)), ((0,), (0,))),
            preferred_element_type=jnp.float32)              # (bt, n, DIM_HEAD)
        head_outs.append(out_h.reshape(rows, DIM_HEAD))

    # ---- output projection: one well-shaped (R, INNER) @ (INNER, DIM) matmul ----
    heads_cat = jnp.concatenate(head_outs, axis=-1)          # (R, INNER)
    out = jnp.dot(heads_cat.astype(mm_dtype), wout_ref[...],
                  preferred_element_type=jnp.float32)        # (R, DIM)

    # Dropout(p=0.0) in to_out is identity at inference time.
    o_ref[...] = out.astype(o_ref.dtype)
    # TODO(synk): DIM=32 means output stores use 32 of 128 lanes (masked vst);
    # a lane-dense (R/4, 128) repack of the I/O slabs would tighten the store
    # path further if it ever becomes the bottleneck (matters most on v5e).


def prenorm_attention(x, gamma, beta, w_qkv, w_out, *,
                      block_rows_target=8192, compute_dtype=None):
    b, n, dim = x.shape
    assert dim == DIM
    assert w_qkv.shape == (DIM, 3 * INNER) and w_out.shape == (INNER, DIM)
    assert gamma.shape == (DIM,) and beta.shape == (DIM,)

    # bf16 MXU operands on v6e/v7x when the activations are bf16; f32 otherwise.
    if compute_dtype is None:
        compute_dtype = jnp.bfloat16 if x.dtype == jnp.bfloat16 else jnp.float32

    # One-time weight transform: fold 1/sqrt(d) into the Q columns of w_qkv so
    # there is no per-row scale multiply inside the kernel.
    w_qkv = w_qkv.astype(jnp.float32).at[:, :INNER].multiply(SCALE)
    w_qkv = w_qkv.astype(compute_dtype)
    w_out = w_out.astype(compute_dtype)

    # ---- block sizing: large row blocks, derived from a VMEM budget ----------
    # Working set ~2.5 KiB/row f32 (double-buffered (R,32) in/out, (R,96) qkv,
    # per-head temporaries) -> ~8K rows stays well under the 32 MiB scoped-VMEM
    # limit requested below on every generation (v5e / v6e / v7x 64-MiB VMEM).
    bb = max(1, min(b, block_rows_target // max(n, 1)))
    if b > 1:
        # keep >= 2 grid steps so the "parallel" axis can shard across v7x's
        # two TensorCores and the pipeline has something to overlap.
        bb = min(bb, pl.cdiv(b, 2))
    # Sublane rule: rows-per-block must be a multiple of 8 when tiling.
    rep = 8 // math.gcd(n, 8)
    bb = max(rep, (bb // rep) * rep)

    grid = pl.cdiv(b, bb)
    b_pad = grid * bb
    if b_pad != b:
        # Zero-pad extra batch elements; attention is per-batch-element so the
        # padding never contaminates real rows. Sliced off below.
        x = jnp.concatenate([x, jnp.zeros((b_pad - b, n, dim), x.dtype)], axis=0)

    rows_per_block = bb * n
    kernel = functools.partial(_prenorm_attn_kernel, bt=bb, n=n)

    # Flatten (b, n, dim) -> (b*n, dim) in the wrapper (free, row-major) so the
    # kernel sees one dense 2-D row slab per grid step.
    x2 = x.reshape(b_pad * n, dim)
    g2 = gamma.reshape(1, dim).astype(jnp.float32)
    b2 = beta.reshape(1, dim).astype(jnp.float32)

    out2 = pl.pallas_call(
        kernel,
        out_shape=jax.ShapeDtypeStruct((b_pad * n, dim), x.dtype),
        grid=(grid,),
        in_specs=[
            pl.BlockSpec((rows_per_block, dim), lambda i: (i, 0)),
            pl.BlockSpec((1, dim), lambda i: (0, 0)),
            pl.BlockSpec((1, dim), lambda i: (0, 0)),
            pl.BlockSpec((DIM, 3 * INNER), lambda i: (0, 0)),
            pl.BlockSpec((INNER, DIM), lambda i: (0, 0)),
        ],
        out_specs=pl.BlockSpec((rows_per_block, dim), lambda i: (i, 0)),
        compiler_params=pltpu.CompilerParams(
            dimension_semantics=("parallel",),
            vmem_limit_bytes=32 * 1024 * 1024),
    )(x2, g2, b2, w_qkv, w_out)

    # TODO(synk): for very long sequences, tile n flash-style (online softmax)
    # inside the block instead of materializing the (bt, n, n) dots.
    out2 = out2[:b * n]
    return out2.reshape(b, n, dim)


def prenorm_attention_ref(x, gamma, beta, w_qkv, w_out):
    """Pure-JAX reference mirroring PyTorch PreNorm(LayerNorm) + Attention."""
    b, n, _ = x.shape
    mean = jnp.mean(x, axis=-1, keepdims=True)
    var = jnp.mean((x - mean) ** 2, axis=-1, keepdims=True)
    x_ln = (x - mean) / jnp.sqrt(var + LN_EPS) * gamma + beta

    qkv = x_ln @ w_qkv
    q, k, v = jnp.split(qkv, 3, axis=-1)

    def split_heads(t):  # 'b n (h d) -> b h n d'
        return t.reshape(b, n, HEADS, DIM_HEAD).transpose(0, 2, 1, 3)

    q, k, v = map(split_heads, (q, k, v))
    dots = jnp.einsum('bhid,bhjd->bhij', q, k) * SCALE
    attn = jax.nn.softmax(dots, axis=-1)
    out = jnp.einsum('bhij,bhjd->bhid', attn, v)
    out = out.transpose(0, 2, 1, 3).reshape(b, n, INNER)   # 'b h n d -> b n (h d)'
    return out @ w_out


if __name__ == "__main__":
    key = jax.random.PRNGKey(0)
    k_x, k_g, k_b, k_qkv, k_out = jax.random.split(key, 5)

    B, N = 2, 8
    x = jax.random.normal(k_x, (B, N, DIM), dtype=jnp.float32)

    # Deterministic synthetic parameters (no checkpoint loading).
    gamma = 1.0 + 0.1 * jax.random.normal(k_g, (DIM,), dtype=jnp.float32)
    beta = 0.1 * jax.random.normal(k_b, (DIM,), dtype=jnp.float32)
    w_qkv = (jax.random.normal(k_qkv, (DIM, 3 * INNER), dtype=jnp.float32)
             * (1.0 / jnp.sqrt(DIM)))
    w_out = (jax.random.normal(k_out, (INNER, DIM), dtype=jnp.float32)
             * (1.0 / jnp.sqrt(INNER)))

    y = prenorm_attention(x, gamma, beta, w_qkv, w_out)
    y = jax.block_until_ready(y)

    y_ref = prenorm_attention_ref(x, gamma, beta, w_qkv, w_out)
    assert y.shape == (B, N, DIM)
    # Slightly looser tolerance because the softmax uses the EUP approx reciprocal.
    assert jnp.allclose(y, y_ref, atol=2e-2, rtol=2e-2), "mismatch vs reference"

    print("KERNEL_OK")
</pallas_src>

<mosaic_0001>
module attributes {stable_mosaic.version = 11 : i64} {
  func.func @_prenorm_attn_kernel(%arg0: i32, %arg1: memref<8x32xf32, #tpu.memory_space<vmem>>, %arg2: memref<1x32xf32, #tpu.memory_space<vmem>>, %arg3: memref<1x32xf32, #tpu.memory_space<vmem>>, %arg4: memref<32x96xf32, #tpu.memory_space<vmem>>, %arg5: memref<32x32xf32, #tpu.memory_space<vmem>>, %arg6: memref<8x32xf32, #tpu.memory_space<vmem>>) attributes {dimension_semantics = [#tpu.dimension_semantics<parallel>], iteration_bounds = array<i64: 2>, scalar_prefetch = 0 : i64, scratch_operands = 0 : i64, tpu.core_type = #tpu.core_type<tc>, window_params = [{transform_indices = @transform_0, window_bounds = array<i64: 8, 32>}, {pipeline_mode = #tpu.pipeline_mode<synchronous>, transform_indices = @transform_1, window_bounds = array<i64: 1, 32>}, {pipeline_mode = #tpu.pipeline_mode<synchronous>, transform_indices = @transform_2, window_bounds = array<i64: 1, 32>}, {pipeline_mode = #tpu.pipeline_mode<synchronous>, transform_indices = @transform_3, window_bounds = array<i64: 32, 96>}, {pipeline_mode = #tpu.pipeline_mode<synchronous>, transform_indices = @transform_4, window_bounds = array<i64: 32, 32>}, {transform_indices = @transform_5, window_bounds = array<i64: 8, 32>}]} {
    %c0 = arith.constant 0 : index
    %c0_0 = arith.constant 0 : index
    %0 = vector.load %arg1[%c0, %c0_0] : memref<8x32xf32, #tpu.memory_space<vmem>>, vector<8x32xf32>
    %cst = arith.constant dense<0.000000e+00> : vector<8xf32>
    %1 = vector.multi_reduction <add>, %0, %cst [1] : vector<8x32xf32> to vector<8xf32>
    %2 = vector.shape_cast %1 : vector<8xf32> to vector<8x1xf32>
    %cst_1 = arith.constant 3.200000e+01 : f32
    %3 = vector.broadcast %cst_1 : f32 to vector<8x1xf32>
    %4 = arith.divf %2, %3 : vector<8x1xf32>
    %5 = vector.broadcast %4 : vector<8x1xf32> to vector<8x32xf32>
    %6 = arith.subf %0, %5 : vector<8x32xf32>
    %7 = arith.mulf %6, %6 : vector<8x32xf32>
    %cst_2 = arith.constant dense<0.000000e+00> : vector<8xf32>
    %8 = vector.multi_reduction <add>, %7, %cst_2 [1] : vector<8x32xf32> to vector<8xf32>
    %9 = vector.shape_cast %8 : vector<8xf32> to vector<8x1xf32>
    %cst_3 = arith.constant 3.200000e+01 : f32
    %10 = vector.broadcast %cst_3 : f32 to vector<8x1xf32>
    %11 = arith.divf %9, %10 : vector<8x1xf32>
    %cst_4 = arith.constant 9.99999974E-6 : f32
    %12 = vector.broadcast %cst_4 : f32 to vector<8x1xf32>
    %13 = arith.addf %11, %12 : vector<8x1xf32>
    %14 = math.rsqrt %13 : vector<8x1xf32>
    %15 = vector.broadcast %14 : vector<8x1xf32> to vector<8x32xf32>
    %16 = arith.mulf %6, %15 : vector<8x32xf32>
    %c0_5 = arith.constant 0 : index
    %c0_6 = arith.constant 0 : index
    %17 = vector.load %arg2[%c0_5, %c0_6] : memref<1x32xf32, #tpu.memory_space<vmem>>, vector<1x32xf32>
    %18 = vector.broadcast %17 : vector<1x32xf32> to vector<8x32xf32>
    %19 = arith.mulf %16, %18 : vector<8x32xf32>
    %c0_7 = arith.constant 0 : index
    %c0_8 = arith.constant 0 : index
    %20 = vector.load %arg3[%c0_7, %c0_8] : memref<1x32xf32, #tpu.memory_space<vmem>>, vector<1x32xf32>
    %21 = vector.broadcast %20 : vector<1x32xf32> to vector<8x32xf32>
    %22 = arith.addf %19, %21 : vector<8x32xf32>
    %c0_9 = arith.constant 0 : index
    %c0_10 = arith.constant 0 : index
    %23 = vector.load %arg4[%c0_9, %c0_10] : memref<32x96xf32, #tpu.memory_space<vmem>>, vector<32x96xf32>
    %cst_11 = arith.constant dense<0.000000e+00> : vector<8x96xf32>
    %24 = tpu.matmul %22, %23, %cst_11 {dimension_numbers = #tpu.dot_dimension_numbers<[1], [0], [0], [1], [0, 0, 1, 1], [], []>} : vector<8x32xf32>, vector<32x96xf32>, vector<8x96xf32> -> vector<8x96xf32>
    %25 = vector.extract_strided_slice %24 {offsets = [0, 0], sizes = [8, 8], strides = [1, 1]} : vector<8x96xf32> to vector<8x8xf32>
    %26 = vector.shape_cast %25 : vector<8x8xf32> to vector<1x8x8xf32>
    %27 = vector.extract_strided_slice %24 {offsets = [0, 32], sizes = [8, 8], strides = [1, 1]} : vector<8x96xf32> to vector<8x8xf32>
    %28 = vector.shape_cast %27 : vector<8x8xf32> to vector<1x8x8xf32>
    %29 = vector.extract_strided_slice %24 {offsets = [0, 64], sizes = [8, 8], strides = [1, 1]} : vector<8x96xf32> to vector<8x8xf32>
    %30 = vector.shape_cast %29 : vector<8x8xf32> to vector<1x8x8xf32>
    %cst_12 = arith.constant dense<0.000000e+00> : vector<1x8x8xf32>
    %31 = tpu.matmul %26, %28, %cst_12 {dimension_numbers = #tpu.dot_dimension_numbers<[2], [2], [1], [1], [0, 0, 0, 1, 1, 1], [0], [0]>} : vector<1x8x8xf32>, vector<1x8x8xf32>, vector<1x8x8xf32> -> vector<1x8x8xf32>
    %cst_13 = arith.constant dense<0xFF800000> : vector<1x8xf32>
    %32 = vector.multi_reduction <maximumf>, %31, %cst_13 [2] : vector<1x8x8xf32> to vector<1x8xf32>
    %33 = vector.shape_cast %32 : vector<1x8xf32> to vector<1x8x1xf32>
    %34 = vector.broadcast %33 : vector<1x8x1xf32> to vector<1x8x8xf32>
    %35 = arith.subf %31, %34 : vector<1x8x8xf32>
    %36 = math.exp %35 : vector<1x8x8xf32>
    %cst_14 = arith.constant dense<0.000000e+00> : vector<1x8xf32>
    %37 = vector.multi_reduction <add>, %36, %cst_14 [2] : vector<1x8x8xf32> to vector<1x8xf32>
    %38 = vector.shape_cast %37 : vector<1x8xf32> to vector<1x8x1xf32>
    %39 = tpu.reciprocal %38 {approx = true} : vector<1x8x1xf32> -> vector<1x8x1xf32>
    %40 = vector.broadcast %39 : vector<1x8x1xf32> to vector<1x8x8xf32>
    %41 = arith.mulf %36, %40 : vector<1x8x8xf32>
    %cst_15 = arith.constant dense<0.000000e+00> : vector<1x8x8xf32>
    %42 = tpu.matmul %41, %30, %cst_15 {dimension_numbers = #tpu.dot_dimension_numbers<[2], [1], [1], [2], [0, 0, 0, 1, 1, 2], [0], [0]>} : vector<1x8x8xf32>, vector<1x8x8xf32>, vector<1x8x8xf32> -> vector<1x8x8xf32>
    %43 = vector.shape_cast %42 : vector<1x8x8xf32> to vector<8x8xf32>
    %44 = vector.extract_strided_slice %24 {offsets = [0, 8], sizes = [8, 8], strides = [1, 1]} : vector<8x96xf32> to vector<8x8xf32>
    %45 = vector.shape_cast %44 : vector<8x8xf32> to vector<1x8x8xf32>
    %46 = vector.extract_strided_slice %24 {offsets = [0, 40], sizes = [8, 8], strides = [1, 1]} : vector<8x96xf32> to vector<8x8xf32>
    %47 = vector.shape_cast %46 : vector<8x8xf32> to vector<1x8x8xf32>
    %48 = vector.extract_strided_slice %24 {offsets = [0, 72], sizes = [8, 8], strides = [1, 1]} : vector<8x96xf32> to vector<8x8xf32>
    %49 = vector.shape_cast %48 : vector<8x8xf32> to vector<1x8x8xf32>
    %cst_16 = arith.constant dense<0.000000e+00> : vector<1x8x8xf32>
    %50 = tpu.matmul %45, %47, %cst_16 {dimension_numbers = #tpu.dot_dimension_numbers<[2], [2], [1], [1], [0, 0, 0, 1, 1, 1], [0], [0]>} : vector<1x8x8xf32>, vector<1x8x8xf32>, vector<1x8x8xf32> -> vector<1x8x8xf32>
    %cst_17 = arith.constant dense<0xFF800000> : vector<1x8xf32>
    %51 = vector.multi_reduction <maximumf>, %50, %cst_17 [2] : vector<1x8x8xf32> to vector<1x8xf32>
    %52 = vector.shape_cast %51 : vector<1x8xf32> to vector<1x8x1xf32>
    %53 = vector.broadcast %52 : vector<1x8x1xf32> to vector<1x8x8xf32>
    %54 = arith.subf %50, %53 : vector<1x8x8xf32>
    %55 = math.exp %54 : vector<1x8x8xf32>
    %cst_18 = arith.constant dense<0.000000e+00> : vector<1x8xf32>
    %56 = vector.multi_reduction <add>, %55, %cst_18 [2] : vector<1x8x8xf32> to vector<1x8xf32>
    %57 = vector.shape_cast %56 : vector<1x8xf32> to vector<1x8x1xf32>
    %58 = tpu.reciprocal %57 {approx = true} : vector<1x8x1xf32> -> vector<1x8x1xf32>
    %59 = vector.broadcast %58 : vector<1x8x1xf32> to vector<1x8x8xf32>
    %60 = arith.mulf %55, %59 : vector<1x8x8xf32>
    %cst_19 = arith.constant dense<0.000000e+00> : vector<1x8x8xf32>
    %61 = tpu.matmul %60, %49, %cst_19 {dimension_numbers = #tpu.dot_dimension_numbers<[2], [1], [1], [2], [0, 0, 0, 1, 1, 2], [0], [0]>} : vector<1x8x8xf32>, vector<1x8x8xf32>, vector<1x8x8xf32> -> vector<1x8x8xf32>
    %62 = vector.shape_cast %61 : vector<1x8x8xf32> to vector<8x8xf32>
    %63 = vector.extract_strided_slice %24 {offsets = [0, 16], sizes = [8, 8], strides = [1, 1]} : vector<8x96xf32> to vector<8x8xf32>
    %64 = vector.shape_cast %63 : vector<8x8xf32> to vector<1x8x8xf32>
    %65 = vector.extract_strided_slice %24 {offsets = [0, 48], sizes = [8, 8], strides = [1, 1]} : vector<8x96xf32> to vector<8x8xf32>
    %66 = vector.shape_cast %65 : vector<8x8xf32> to vector<1x8x8xf32>
    %67 = vector.extract_strided_slice %24 {offsets = [0, 80], sizes = [8, 8], strides = [1, 1]} : vector<8x96xf32> to vector<8x8xf32>
    %68 = vector.shape_cast %67 : vector<8x8xf32> to vector<1x8x8xf32>
    %cst_20 = arith.constant dense<0.000000e+00> : vector<1x8x8xf32>
    %69 = tpu.matmul %64, %66, %cst_20 {dimension_numbers = #tpu.dot_dimension_numbers<[2], [2], [1], [1], [0, 0, 0, 1, 1, 1], [0], [0]>} : vector<1x8x8xf32>, vector<1x8x8xf32>, vector<1x8x8xf32> -> vector<1x8x8xf32>
    %cst_21 = arith.constant dense<0xFF800000> : vector<1x8xf32>
    %70 = vector.multi_reduction <maximumf>, %69, %cst_21 [2] : vector<1x8x8xf32> to vector<1x8xf32>
    %71 = vector.shape_cast %70 : vector<1x8xf32> to vector<1x8x1xf32>
    %72 = vector.broadcast %71 : vector<1x8x1xf32> to vector<1x8x8xf32>
    %73 = arith.subf %69, %72 : vector<1x8x8xf32>
    %74 = math.exp %73 : vector<1x8x8xf32>
    %cst_22 = arith.constant dense<0.000000e+00> : vector<1x8xf32>
    %75 = vector.multi_reduction <add>, %74, %cst_22 [2] : vector<1x8x8xf32> to vector<1x8xf32>
    %76 = vector.shape_cast %75 : vector<1x8xf32> to vector<1x8x1xf32>
    %77 = tpu.reciprocal %76 {approx = true} : vector<1x8x1xf32> -> vector<1x8x1xf32>
    %78 = vector.broadcast %77 : vector<1x8x1xf32> to vector<1x8x8xf32>
    %79 = arith.mulf %74, %78 : vector<1x8x8xf32>
    %cst_23 = arith.constant dense<0.000000e+00> : vector<1x8x8xf32>
    %80 = tpu.matmul %79, %68, %cst_23 {dimension_numbers = #tpu.dot_dimension_numbers<[2], [1], [1], [2], [0, 0, 0, 1, 1, 2], [0], [0]>} : vector<1x8x8xf32>, vector<1x8x8xf32>, vector<1x8x8xf32> -> vector<1x8x8xf32>
    %81 = vector.shape_cast %80 : vector<1x8x8xf32> to vector<8x8xf32>
    %82 = vector.extract_strided_slice %24 {offsets = [0, 24], sizes = [8, 8], strides = [1, 1]} : vector<8x96xf32> to vector<8x8xf32>
    %83 = vector.shape_cast %82 : vector<8x8xf32> to vector<1x8x8xf32>
    %84 = vector.extract_strided_slice %24 {offsets = [0, 56], sizes = [8, 8], strides = [1, 1]} : vector<8x96xf32> to vector<8x8xf32>
    %85 = vector.shape_cast %84 : vector<8x8xf32> to vector<1x8x8xf32>
    %86 = vector.extract_strided_slice %24 {offsets = [0, 88], sizes = [8, 8], strides = [1, 1]} : vector<8x96xf32> to vector<8x8xf32>
    %87 = vector.shape_cast %86 : vector<8x8xf32> to vector<1x8x8xf32>
    %cst_24 = arith.constant dense<0.000000e+00> : vector<1x8x8xf32>
    %88 = tpu.matmul %83, %85, %cst_24 {dimension_numbers = #tpu.dot_dimension_numbers<[2], [2], [1], [1], [0, 0, 0, 1, 1, 1], [0], [0]>} : vector<1x8x8xf32>, vector<1x8x8xf32>, vector<1x8x8xf32> -> vector<1x8x8xf32>
    %cst_25 = arith.constant dense<0xFF800000> : vector<1x8xf32>
    %89 = vector.multi_reduction <maximumf>, %88, %cst_25 [2] : vector<1x8x8xf32> to vector<1x8xf32>
    %90 = vector.shape_cast %89 : vector<1x8xf32> to vector<1x8x1xf32>
    %91 = vector.broadcast %90 : vector<1x8x1xf32> to vector<1x8x8xf32>
    %92 = arith.subf %88, %91 : vector<1x8x8xf32>
    %93 = math.exp %92 : vector<1x8x8xf32>
    %cst_26 = arith.constant dense<0.000000e+00> : vector<1x8xf32>
    %94 = vector.multi_reduction <add>, %93, %cst_26 [2] : vector<1x8x8xf32> to vector<1x8xf32>
    %95 = vector.shape_cast %94 : vector<1x8xf32> to vector<1x8x1xf32>
    %96 = tpu.reciprocal %95 {approx = true} : vector<1x8x1xf32> -> vector<1x8x1xf32>
    %97 = vector.broadcast %96 : vector<1x8x1xf32> to vector<1x8x8xf32>
    %98 = arith.mulf %93, %97 : vector<1x8x8xf32>
    %cst_27 = arith.constant dense<0.000000e+00> : vector<1x8x8xf32>
    %99 = tpu.matmul %98, %87, %cst_27 {dimension_numbers = #tpu.dot_dimension_numbers<[2], [1], [1], [2], [0, 0, 0, 1, 1, 2], [0], [0]>} : vector<1x8x8xf32>, vector<1x8x8xf32>, vector<1x8x8xf32> -> vector<1x8x8xf32>
    %100 = vector.shape_cast %99 : vector<1x8x8xf32> to vector<8x8xf32>
    %101 = tpu.concatenate %43, %62, %81, %100 in 1 : vector<8x8xf32>, vector<8x8xf32>, vector<8x8xf32>, vector<8x8xf32> -> vector<8x32xf32>
    %c0_28 = arith.constant 0 : index
    %c0_29 = arith.constant 0 : index
    %102 = vector.load %arg5[%c0_28, %c0_29] : memref<32x32xf32, #tpu.memory_space<vmem>>, vector<32x32xf32>
    %cst_30 = arith.constant dense<0.000000e+00> : vector<8x32xf32>
    %103 = tpu.matmul %101, %102, %cst_30 {dimension_numbers = #tpu.dot_dimension_numbers<[1], [0], [0], [1], [0, 0, 1, 1], [], []>} : vector<8x32xf32>, vector<32x32xf32>, vector<8x32xf32> -> vector<8x32xf32>
    %c0_31 = arith.constant 0 : index
    %c0_32 = arith.constant 0 : index
    %104 = vector.load %arg6[%c0_31, %c0_32] : memref<8x32xf32, #tpu.memory_space<vmem>>, vector<8x32xf32>
    tpu.vector_store %arg6[%c0_31, %c0_32], %103 {strides = array<i32>} : memref<8x32xf32, #tpu.memory_space<vmem>>, vector<8x32xf32>,
    return
  }
  func.func @transform_0(%arg0: i32) -> (i32, i32) {
    %c0_i32 = arith.constant 0 : i32
    %c0_i32_0 = arith.constant 0 : i32
    return %arg0, %c0_i32 : i32, i32
  }
  func.func @transform_1(%arg0: i32) -> (i32, i32) {
    %c0_i32 = arith.constant 0 : i32
    %c0_i32_0 = arith.constant 0 : i32
    %c0_i32_1 = arith.constant 0 : i32
    return %c0_i32, %c0_i32_0 : i32, i32
  }
  func.func @transform_2(%arg0: i32) -> (i32, i32) {
    %c0_i32 = arith.constant 0 : i32
    %c0_i32_0 = arith.constant 0 : i32
    %c0_i32_1 = arith.constant 0 : i32
    return %c0_i32, %c0_i32_0 : i32, i32
  }
  func.func @transform_3(%arg0: i32) -> (i32, i32) {
    %c0_i32 = arith.constant 0 : i32
    %c0_i32_0 = arith.constant 0 : i32
    %c0_i32_1 = arith.constant 0 : i32
    return %c0_i32, %c0_i32_0 : i32, i32
  }
  func.func @transform_4(%arg0: i32) -> (i32, i32) {
    %c0_i32 = arith.constant 0 : i32
    %c0_i32_0 = arith.constant 0 : i32
    %c0_i32_1 = arith.constant 0 : i32
    return %c0_i32, %c0_i32_0 : i32, i32
  }
  func.func @transform_5(%arg0: i32) -> (i32, i32) {
    %c0_i32 = arith.constant 0 : i32
    %c0_i32_0 = arith.constant 0 : i32
    return %arg0, %c0_i32 : i32, i32
  }
}

</mosaic_0001>

<bundles_post_ra>
// kernel: tpu_custom_call.1
= control target key start
LH: loop header
LB: loop body
LE: loop exit
PB: predicated region body
PF: predicated region fallthrough
CT: control target
= control target key end

     0   :  { %10 = vsyncpa [#allocation3], 0  ;;  %s1997_s0 = inlined_call_operand.hbm [shape: f32[16,32], index: 0, kind: input, shape index: {}]   ;;  %s1998_s1 = inlined_call_operand.vmem [shape: f32[1,32], index: 1, kind: input, shape index: {}]   ;;  %s1999_s2 = inlined_call_operand.vmem [shape: f32[1,32], index: 2, kind: input, shape index: {}]   ;;  %s2000_s3 = inlined_call_operand.hbm [shape: f32[32,96], index: 3, kind: input, shape index: {}]   ;;  %s2001_s4 = inlined_call_operand.hbm [shape: f32[32,32], index: 4, kind: input, shape index: {}]   ;;  %s2002_s5 = inlined_call_operand.hbm [shape: f32[16,32], index: 5, kind: output, shape index: {}]  }
   0x1   :  { %12 = vsyncpa [#allocation3 + $0x1], 0 }
   0x2   :  { %13 = vsyncpa [#allocation6], 0 }
   0x3   :  { %14 = vsyncpa [#allocation4], 0 }
   0x4   :  { %16 = vsyncpa [#allocation4 + $0x1], 0  ;;  %s1683_s18 = smov 0   ;;  %s1685_s19 = smov 0  }
   0x5   :  { %s1687_s20 = smov 0   ;;  %s1689_s21 = smov 0  }
   0x6 LB: > { %s1704_s22 = sadd.s32 4294967295, %s1628_s21   ;;  %s1236_s23 = sadd.s32 4294967294, %s1628_s21   ;;  %s1628_s21 = sphi %s1689_s21, %s2022_s21   ;;  %s1624_s20 = sphi %s1687_s20, %s2021_s20   ;;  %s1620_s19 = sphi %s1685_s19, %s2020_s19   ;;  %s1616_s18 = sphi %s1683_s18, %s2019_s18  }
   0x7   : > { %p42_p0 = scmp.ne.s32.totalorder %s1620_s19, %s1616_s18  ;;  %p2003_p1 = scmp.eq.s32.totalorder %s1704_s22, 0 }
   0x8   : > { %p156_p3 = scmp.eq.s32.totalorder %s1236_s23, 1  ;;  %p1237_p5 = scmp.ge.s32.totalorder %s1628_s21, 1 }
   0x9   : > { %p1713_p4 = por %p2003_p1, %p42_p0  ;;  %p163_p7 = scmp.lt.s32.totalorder %s1628_s21, 3 }
   0xa   : > { %p1718_p6 = por %p156_p3, %p42_p0  ;;  %s1630_s27 = smov [#allocation5]  }
   0xb   : > { %s2006_s24 = scalar_select %p1713_p4, 1, 0 }
   0xc   : > { %s2007_s25 = scalar_select %p1718_p6, 1, 0 }
   0xd   : > { %p1723_p8 = pnand %p1237_p5, %p163_p7  ;;  %s181_s28 = sshll.u32 %s1630_s27, 4  ;;  %s1727_s28 = int_to_ptr.vmem [resolvable:$true] %s181_s28 }
   0xe   : > { %s1631_s30 = smov [#allocation7]   ;;  %s1472_s9 = scalar_lea.hbm %s2000_s3, 512 }
   0xf   : > { %p1380_p9 = pneg %p1723_p8  ;;  %s194_s6 = sshll.u32 %s1631_s30, 4  ;;  %s1738_s6 = int_to_ptr.vmem [resolvable:$true] %s194_s6 }
  0x10   : > { %p1473_p12 = scmp.ne.s32.totalorder %s2000_s3, %s1472_s9  ;;  %p1479_p5 = scmp.lt.u32.totalorder %s1472_s9, %s2000_s3 }
  0x11   : > { %p1734_p11 = pnand %p1380_p9, %p2003_p1 }
  0x13   : > { %p1474_p13 = pneg %p1734_p11 }
  0x15   : > { %p1475_p0 = pnand %p1474_p13, %p1473_p12 }
  0x17   : > { %p1476_p3 = pneg %p1475_p0 }
  0x19   : > { %p1481_p7 = pnand %p1479_p5, %p1476_p3 }
  0x1b   : > { %1484 = shalt.err (!%p1481_p7)
}
  0x1c   : > { %s1485_s14 = scalar_lea.vmem %s1727_s28, 512  ;;  %p1493_p2 = scmp.lt.s32.totalorder %s1727_s28, %s1727_s28 }
  0x1d   : > { %p1486_p9 = scmp.ne.s32.totalorder %s1727_s28, %s1485_s14  ;;  %p1494_p12 = scmp.lt.s32.totalorder %s1485_s14, %s1485_s14 }
  0x1f   : > { %p1488_p10 = pnand %p1486_p9, %p1474_p13  ;;  %p1495_p0 = por %p1494_p12, %p1493_p2 }
  0x21   : > { %p1489_p1 = pneg %p1488_p10 }
  0x23   : > { %p1496_p6 = pnand %p1495_p0, %p1489_p1 }
  0x25   : > { %1499 = shalt.err (!%p1496_p6)
}
  0x26   : > { %s1632_s15 = smov 128   ;;  %s1633_s16 = smov 8  }
  0x27   : > { %1383 = dma.hbm_to_vmem [thread:$0]  (!%p1734_p11), %s2000_s3, 512, %s1727_s28, [#allocation6], %s1632_s15, %s1632_s15, %s1633_s16  }
  0x28   : > { %s1500_s7 = scalar_lea.hbm %s2001_s4, 512 }
  0x29   : > { %p1501_p2 = scmp.ne.s32.totalorder %s2001_s4, %s1500_s7  ;;  %p1507_p10 = scmp.lt.u32.totalorder %s1500_s7, %s2001_s4 }
  0x2b   : > { %p1503_p1 = pnand %p1501_p2, %p1474_p13 }
  0x2d   : > { %p1504_p6 = pneg %p1503_p1 }
  0x2f   : > { %p1509_p3 = pnand %p1507_p10, %p1504_p6 }
  0x31   : > { %1512 = shalt.err (!%p1509_p3)
}
  0x32   : > { %s1513_s28 = scalar_lea.vmem %s1738_s6, 512  ;;  %p1521_p12 = scmp.lt.s32.totalorder %s1738_s6, %s1738_s6 }
  0x33   : > { %p1514_p5 = scmp.ne.s32.totalorder %s1738_s6, %s1513_s28  ;;  %p1522_p0 = scmp.lt.s32.totalorder %s1513_s28, %s1513_s28 }
  0x35   : > { %p1516_p7 = pnand %p1514_p5, %p1474_p13  ;;  %p1523_p2 = por %p1522_p0, %p1521_p12 }
  0x37   : > { %p1517_p9 = pneg %p1516_p7 }
  0x39   : > { %p1524_p1 = pnand %p1523_p2, %p1517_p9 }
  0x3b   : > { %1527 = shalt.err (!%p1524_p1)
}
  0x3c   : > { %1386 = dma.hbm_to_vmem [thread:$0]  (!%p1734_p11), %s2001_s4, 512, %s1738_s6, [#allocation6], %s1632_s15, %s1632_s15, %s1633_s16  }
  0x3d   : > { %s1793_s14 = sadd.s32 1, %s1628_s21   ;;  %s29_s29 = sadd.s32 1, %s1624_s20 }
  0x3e   : > { %s26_s17 = ssub.s32 %s1628_s21, %s1793_s14  ;;  %p36_p13 = scmp.ne.s32.totalorder %s1624_s20, %s1620_s19 }
  0x3f   : > { %p27_p6 = scmp.eq.s32.totalorder %s26_s17, 0  ;;  %p37_p10 = scmp.eq.s32.totalorder %s1628_s21, 0 }
  0x40   : > { %p2010_p3 = scmp.eq.s32.totalorder %s1704_s22, 1  ;;  %p1397_p7 = scmp.lt.s32.totalorder %s1628_s21, 2 }
  0x41   : > { %s1809_s27 = scalar_select %p27_p6, %s1624_s20, %s29_s29  }
  0x42   : > { %p1803_p5 = por %p2010_p3, %p36_p13  ;;  %p38_p9 = por %p37_p10, %p36_p13 }
  0x43   : > { %s208_s30 = sand.u32 1, %s1624_s20   ;;  %s1242_s6 = sshll.u32 %s1628_s21, 7 }
  0x44   : > { %s2011_s23 = scalar_select %p1803_p5, 1, 0 }
  0x45   : > { %s1241_s7 = sshll.u32 %s208_s30, 3  ;;  %s1816_s8 = scalar_lea.hbm %s1997_s0, %s1242_s6 }
  0x46   : > { %s212_s9 = scalar_lea.vmem [#allocation2], %s1241_s7  ;;  %p1820_p11 = pnand %p1397_p7, %p38_p9 }
  0x47   : > { %s219_s10 = sshll.u32 %s212_s9, 4  ;;  %s209_s28 = scalar_lea.sflag [#allocation3], %s208_s30  ;;  %s1818_s10 = int_to_ptr.vmem [resolvable:$true] %s219_s10 }
  0x48   : > { %s1528_s12 = scalar_lea.hbm %s1816_s8, 128  ;;  %p1530_p0 = pneg %p1820_p11 }
  0x49   : > { %p1529_p12 = scmp.ne.s32.totalorder %s1816_s8, %s1528_s12  ;;  %s1533_s17 = scalar_lea.hbm %s1997_s0, 256 }
  0x4a   : > { %p1534_p13 = scmp.lt.u32.totalorder %s1816_s8, %s1997_s0  ;;  %p1535_p6 = scmp.lt.u32.totalorder %s1533_s17, %s1528_s12 }
  0x4b   : > { %p1531_p2 = pnand %p1530_p0, %p1529_p12  ;;  %p1537_p3 = scmp.lt.u32.totalorder %s1528_s12, %s1816_s8 }
  0x4c   : > { %p1536_p10 = por %p1535_p6, %p1534_p13 }
  0x4d   : > { %p1532_p1 = pneg %p1531_p2 }
  0x4e   : > { %p1538_p7 = por %p1537_p3, %p1536_p10 }
  0x50   : > { %p1539_p9 = pnand %p1538_p7, %p1532_p1 }
  0x52   : > { %1542 = shalt.err (!%p1539_p9)
}
  0x53   : > { %s1543_s30 = scalar_lea.vmem %s1818_s10, 128  ;;  %s1634_s15 = smov [#allocation2]  }
  0x54   : > { %p1544_p12 = scmp.ne.s32.totalorder %s1818_s10, %s1543_s30  ;;  %s1548_s16 = sshll.u32 %s1634_s15, 4  ;;  %s1549_s16 = int_to_ptr.vmem [resolvable:$false] %s1548_s16 }
  0x55   : > { %s1550_s9 = scalar_lea.vmem %s1549_s16, 256  ;;  %p1551_p4 = scmp.lt.s32.totalorder %s1818_s10, %s1549_s16 }
  0x56   : > { %p1546_p2 = pnand %p1544_p12, %p1530_p0  ;;  %p1552_p13 = scmp.lt.s32.totalorder %s1550_s9, %s1543_s30 }
  0x58   : > { %p1547_p5 = pneg %p1546_p2  ;;  %p1553_p6 = por %p1552_p13, %p1551_p4 }
  0x5a   : > { %p1554_p10 = pnand %p1553_p6, %p1547_p5 }
  0x5c   : > { %1557 = shalt.err (!%p1554_p10)
}
  0x5d   : > { %1390 = dma.hbm_to_vmem [thread:$0]  (!%p1820_p11), %s1816_s8, 128, %s1818_s10, %s209_s28  }
  0x5e   : > { %228 = sbr.rel (%p1723_p8) target bundleno = 2367 (0x93f), region = 40  ;;  %s1852_s12 = sand.u32 (!%p1723_p8), 1, %s1620_s19  }
  0x5f   : > { %s1244_s13 = sshll.u32 (!%p1723_p8), %s1852_s12, 3  ;;  %s231_s29 = scalar_lea.sflag (!%p1723_p8), [#allocation3], %s1852_s12 }
  0x60   : > { %s234_s17 = scalar_lea.vmem (!%p1723_p8), [#allocation2], %s1244_s13  ;;  %p2013_p4 = scmp.ne.s32.totalorder (!%p1723_p8), %s2006_s24, 0 }
  0x65   : > { %1603 = dma.done.wait (%p2013_p4), %s231_s29, 128  }
  0x66   : > { %1605 = vsyncadd (%p2013_p4), %s231_s29, 4294967168  ;;  %p2014_p5 = scmp.eq.s32.totalorder %s1704_s22, 0 }
  0x68   : > { %1607 = dma.done.wait (%p2014_p5), [#allocation6], 1024   ;;  %p2015_p8 = pmov %p2014_p5 }
  0x69   : > { %vm270_vm0 = vcmask 261120   ;;  %v269_v0 = vld [vmem:[%s234_s17] sm:$0xff]  ;;  %v301_v7 = vld [vmem:[#allocation5] sm:$0xff]  ;;  %v302_v8 = vld [vmem:[#allocation5 + $0x8] sm:$0xff]  ;;  %v1635_v10 = vmov 0.0|0.0   ;;  %vm1636_vm1 = vmmov 0  }
  0x6a   : > { %1609 = vsyncadd (%p2015_p8), [#allocation6], 4294966272  ;;  %v271_v1 = vsel %vm270_vm0, %v269_v0, 0.0  ;;  %v303_v9 = vld [vmem:[#allocation5 + $0x10] sm:$0xff]  ;;  %1356 = vmatprep.subr.bf16.mxu0 %v1635_v10  ;;  %v1357_v11 = vpack.c.bf16 %v302_v8, %v301_v7  ;;  %v304_v12 = vld [vmem:[#allocation5 + $0x18] sm:$0xff]  ;;  %v1637_v13 = vmov 0.0  }
  0x6b   : > { %272 = vadd.xlane.f32.xlu0 %v271_v1  ;;  %1302 = vmatprep.mubr.msk.f32.mxu0 %vm1636_vm1, %v1637_v13  ;;  %v1360_v14 = vpack.c.bf16 %v304_v12, %v303_v9  ;;  %v1248_v19 = vld [vmem:[%s1998_s1] ss:$0 sm:$0xff]  ;;  %s1638_s11 = smov 64   ;;  %s1639_s28 = smov 96   ;;  %vm381_vm2 = vcmask 64512   ;;  %vm1051_vm3 = vcmask 130048  }
  0x6c   : > { %1305 = vmatprep.subr.mxu1 %v1637_v13  ;;  %1307 = vmatprep.mubr.msk.f32.mxu1 %vm1636_vm1, %v1637_v13  ;;  %v1249_v21 = vld [vmem:[%s1999_s2] ss:$0 sm:$0xff]  ;;  %s1640_s7 = smov 88   ;;  %s1641_s6 = smov 120   ;;  %vm1053_vm4 = vcmask 195584  }
  0x6d   : > { %1358 = vmatpush3.bf16.msra.mxu0 %v1357_v11  ;;  %s1642_s30 = smov 80   ;;  %s1643_s15 = smov 112  }
  0x6e   : > { %1359 = vmatprep.subr.bf16.mxu0 %v1635_v10  ;;  %s1644_s16 = smov 72   ;;  %s1645_s9 = smov 104  }
  0x6f   : > { %s1646_s29 = smov 48   ;;  %s1647_s17 = smov 56  }
  0x70   : > { %s1648_s24 = smov 40   ;;  %s1649_s26 = smov 8  }
  0x71   : > { %1361 = vmatpush3.bf16.msra.mxu0 %v1360_v14  ;;  %s1650_s8 = smov 16   ;;  %s1651_s10 = smov 24  }
  0x72   : > { %1325 = vmatprep.subr.mxu0 %v1637_v13  ;;  %p2016_p0 = scmp.ne.s32.totalorder %s2011_s23, 0 }
  0xf8   : > { %v273_v2 = vpop.xlane.xlu0 %272 }
  0xf9   : > { %v275_v3 = vmul.f32 0.03125, %v273_v2 }
  0xfb   : > { %v276_v4 = vsub.f32 %v269_v0, %v275_v3 }
  0xfd   : > { %v277_v5 = vmul.f32 %v276_v4, %v276_v4 }
  0xff   : > { %v278_v6 = vsel %vm270_vm0, %v277_v5, 0.0 }
 0x100   : > { %279 = vadd.xlane.f32.xlu0 %v278_v6 }
 0x18d   : > { %v280_v15 = vpop.xlane.xlu0 %279 }
 0x18e   : > { %v281_v16 = vmul.f32 0.03125, %v280_v15 }
 0x190   : > { %v282_v17 = vadd.f32 1e-05, %v281_v16 }
 0x192   : > { %1454 = vrsqrt.f32 %v282_v17 }
 0x19c   : > { %v1455_v18 = vpop.eup %1454 }
 0x19d   : > { %v284_v20 = vmul.f32 %v1455_v18, %v276_v4 }
 0x19f   : > { %v292_v22 = vmul.f32 %v1248_v19, %v284_v20 }
 0x1a1   : > { %v300_v23 = vadd.f32 %v1249_v21, %v292_v22  ;;  %v1055_v21 = vld [vmem:[#allocation7] sm:$0xff]  ;;  %v1056_v22 = vld [vmem:[#allocation7 + $0x8] sm:$0xff] }
 0x1a3   : > { %1303 = vmatmul.mubr.msk.f32.vlgmr.msra.gmra.mrb[0].mxu0 %vm270_vm0, %v300_v23  ;;  %v1363_v23 = vpack.c.bf16 %v1056_v22, %v1055_v21 }
 0x1a4   : > { %1327 = vmatprep.mubr.msk.f32.mxu0 %vm1636_vm1, %v1637_v13 }
 0x276   : > { %v1885_v24 = vpop.f32.mrb[0].mxu0 }
 0x277   : > { %467 = vrot.lane.b32.xlu0 %v1885_v24, %s1638_s11  ;;  %379 = vrot.lane.b32.xlu1 %v1885_v24, %s1639_s28  ;;  %v1304_v25 = vpop.f32.mrb[1].mxu0  ;;  %s1265_s11 = sshll.u32 %s1704_s22, 7  ;;  %s268_s28 = scalar_lea.vmem [#allocation8], %s1244_s13 }
 0x278   : > { %v1058_v25 = vld [vmem:[#allocation7 + $0x18] sm:$0xff]  ;;  %s1652_s22 = smov [#allocation8]  }
 0x279   : > { %s1562_s13 = sshll.u32 %s1652_s22, 4  ;;  %s1563_s13 = int_to_ptr.vmem [resolvable:$false] %s1562_s13 }
 0x27b   : > { %545 = vrot.lane.b32.xlu0 %v1885_v24, %s1640_s7  ;;  %s1147_s7 = sshll.u32 %s268_s28, 4  ;;  %s1954_s7 = int_to_ptr.vmem [resolvable:$true] %s1147_s7 }
 0x27c   : > { %p1565_p7 = scmp.lt.s32.totalorder %s1954_s7, %s1563_s13 }
 0x27f   : > { %543 = vrot.lane.b32.xlu0 %v1885_v24, %s1641_s6 }
 0x2e9   : > { %v380_v26 = vpop.permute.xlu1 %379  ;;  %v468_v27 = vpop.permute.xlu0 %467 }
 0x2ea   : > { %1306 = vmatpush3.xpose.msk.msra.mxu1 %vm381_vm2, %v380_v26 }
 0x2eb   : > { %1310 = vmatprep.subr.mxu1 %v1637_v13 }
 0x2ed   : > { %1308 = vmatmul.mubr.msk.f32.vlgmr.msra.gmra.mrb[0].mxu1 %vm381_vm2, %v1885_v24  ;;  %v546_v37 = vpop.permute.xlu0 %545 }
 0x2ee   : > { %1311 = vmatpush3.msra.mxu1 %v468_v27  ;;  %1312 = vmatprep.mubr.msk.f32.mxu1 %vm1636_vm1, %v1637_v13 }
 0x2ef   : > { %1315 = vmatprep.subr.mxu1 %v1637_v13 }
 0x2f1   : > { %v544_v38 = vpop.permute.xlu0 %543 }
 0x3c0   : > { %v452_v28 = vpop.f32.mrb[0].mxu1 }
 0x3c1   : > { %v1309_v29 = vpop.f32.mrb[1].mxu1  ;;  %v456_v30 = vsel %vm381_vm2, %v452_v28, -inf }
 0x3c2   : > { %457 = vmax.xlane.f32.xlu1 %v456_v30 }
 0x3d3   : > { %710 = vrot.lane.b32.xlu1 %v1885_v24, %s1642_s30 }
 0x44f   : > { %v458_v31 = vpop.xlane.xlu1 %457 }
 0x450   : > { %v459_v32 = vsub.f32 %v452_v28, %v458_v31 }
 0x452   : > { %v460_v33 = vmul.f32 1.442695, %v459_v32 }
 0x453   : > { %v711_v34 = vpop.permute.xlu1 %710 }
 0x454   : > { %1456 = vpow2.f32 %v460_v33  ;;  %1326 = vmatpush3.xpose.msk.msra.mxu0 %vm381_vm2, %v711_v34 }
 0x455   : > { %1335 = vmatprep.subr.mxu0 %v1637_v13 }
 0x45e   : > { %v1457_v35 = vpop.eup %1456 }
 0x45f   : > { %v462_v36 = vsel %vm381_vm2, %v1457_v35, 0.0 }
 0x460   : > { %463 = vadd.xlane.f32.xlu0 %v462_v36 }
 0x476   : > { %708 = vrot.lane.b32.xlu0 %v1885_v24, %s1643_s15  ;;  %s1952_s15 = scalar_lea.hbm %s2002_s5, %s1265_s11 }
 0x47a   : > { %875 = vrot.lane.b32.xlu0 %v1885_v24, %s1644_s16  ;;  %s1134_s16 = scalar_lea.sflag [#allocation4], %s1852_s12 }
 0x47e   : > { %873 = vrot.lane.b32.xlu0 %v1885_v24, %s1645_s9  ;;  %s1558_s9 = scalar_lea.vmem %s1954_s7, 128 }
 0x47f   : > { %p1559_p11 = scmp.ne.s32.totalorder %s1954_s7, %s1558_s9 }
 0x481   : > { %p1560_p1 = pnand %p1559_p11, %p2016_p0 }
 0x483   : > { %p1561_p3 = pneg %p1560_p1 }
 0x4ed   : > { %v464_v39 = vpop.xlane.xlu0 %463 }
 0x4ee   : > { %1458 = vrcp.f32 %v464_v39 }
 0x4f1   : > { %v709_v40 = vpop.permute.xlu0 %708 }
 0x4f2   : > { %1328 = vmatmul.mubr.msk.f32.vlgmr.msra.gmra.mrb[2].mxu0 %vm381_vm2, %v709_v40 }
 0x4f3   : > { %1337 = vmatprep.mubr.msk.f32.mxu0 %vm1636_vm1, %v1637_v13 }
 0x4f5   : > { %v876_v41 = vpop.permute.xlu0 %875 }
 0x4f6   : > { %1336 = vmatpush3.xpose.msk.msra.mxu0 %vm381_vm2, %v876_v41 }
 0x4f7   : > { %1362 = vmatprep.subr.bf16.mxu0 %v1635_v10 }
 0x4f8   : > { %v1459_v42 = vpop.eup %1458 }
 0x4f9   : > { %v466_v43 = vmul.f32 %v1459_v42, %v1457_v35  ;;  %v874_v44 = vpop.permute.xlu0 %873 }
 0x4fa   : > { %1338 = vmatmul.mubr.msk.f32.vlgmr.msra.gmra.mrb[4].mxu0 %vm381_vm2, %v874_v44 }
 0x4fb   : > { %1313 = vmatmul.mubr.msk.f32.vlgmr.msra.gmra.mrb[2].mxu1 %vm381_vm2, %v466_v43  ;;  %1353 = vmatprep.mubr.msk.f32.mxu0 %vm1636_vm1, %v1637_v13 }
 0x4fc   : > { %1316 = vmatpush3.xpose.msk.msra.mxu1 %vm381_vm2, %v546_v37  ;;  %1317 = vmatprep.mubr.msk.f32.mxu1 %vm1636_vm1, %v1637_v13 }
 0x4fd   : > { %1320 = vmatprep.subr.mxu1 %v1637_v13  ;;  %1364 = vmatpush3.bf16.msra.mxu0 %v1363_v23 }
 0x4fe   : > { %1365 = vmatprep.subr.bf16.mxu0 %v1635_v10 }
 0x4ff   : > { %1318 = vmatmul.mubr.msk.f32.vlgmr.msra.gmra.mrb[4].mxu1 %vm381_vm2, %v544_v38 }
 0x500   : > { %1322 = vmatprep.mubr.msk.f32.mxu1 %vm1636_vm1, %v1637_v13 }
 0x5c5   : > { %v782_v45 = vpop.f32.mrb[2].mxu0 }
 0x5c6   : > { %v1329_v46 = vpop.f32.mrb[3].mxu0  ;;  %v786_v47 = vsel %vm381_vm2, %v782_v45, -inf }
 0x5c7   : > { %787 = vmax.xlane.f32.xlu1 %v786_v47 }
 0x5cd   : > { %v947_v48 = vpop.f32.mrb[4].mxu0 }
 0x5ce   : > { %v1923_v49 = vpop.f32.mrb[2].mxu1  ;;  %v1339_v50 = vpop.f32.mrb[5].mxu0  ;;  %v951_v55 = vsel %vm381_vm2, %v947_v48, -inf }
 0x5cf   : > { %v1314_v51 = vpop.f32.mrb[3].mxu1 }
 0x5d2   : > { %v617_v52 = vpop.f32.mrb[4].mxu1 }
 0x5d3   : > { %v1319_v53 = vpop.f32.mrb[5].mxu1  ;;  %v621_v54 = vsel %vm381_vm2, %v617_v52, -inf }
 0x5d4   : > { %622 = vmax.xlane.f32.xlu0 %v621_v54 }
 0x5d8   : > { %952 = vmax.xlane.f32.xlu0 %v951_v55 }
 0x654   : > { %v788_v56 = vpop.xlane.xlu1 %787 }
 0x655   : > { %v789_v57 = vsub.f32 %v782_v45, %v788_v56 }
 0x657   : > { %v790_v58 = vmul.f32 1.442695, %v789_v57 }
 0x659   : > { %1460 = vpow2.f32 %v790_v58 }
 0x661   : > { %v623_v59 = vpop.xlane.xlu0 %622 }
 0x662   : > { %v624_v60 = vsub.f32 %v617_v52, %v623_v59 }
 0x663   : > { %v1461_v61 = vpop.eup %1460 }
 0x664   : > { %v625_v62 = vmul.f32 1.442695, %v624_v60  ;;  %v792_v63 = vsel %vm381_vm2, %v1461_v61, 0.0 }
 0x665   : > { %793 = vadd.xlane.f32.xlu0 %v792_v63  ;;  %v953_v0 = vpop.xlane.xlu0 %952 }
 0x666   : > { %1462 = vpow2.f32 %v625_v62  ;;  %v954_v1 = vsub.f32 %v947_v48, %v953_v0 }
 0x668   : > { %v955_v2 = vmul.f32 1.442695, %v954_v1 }
 0x66a   : > { %1464 = vpow2.f32 %v955_v2 }
 0x670   : > { %v1463_v3 = vpop.eup %1462 }
 0x671   : > { %v627_v4 = vsel %vm381_vm2, %v1463_v3, 0.0 }
 0x672   : > { %628 = vadd.xlane.f32.xlu0 %v627_v4 }
 0x674   : > { %v1465_v5 = vpop.eup %1464 }
 0x675   : > { %v957_v6 = vsel %vm381_vm2, %v1465_v5, 0.0 }
 0x676   : > { %958 = vadd.xlane.f32.xlu1 %v957_v6 }
 0x687   : > { %797 = vrot.lane.b32.xlu1 %v1885_v24, %s1646_s29  ;;  %s1564_s29 = scalar_lea.vmem %s1563_s13, 256 }
 0x688   : > { %632 = vrot.lane.b32.xlu0 %v1885_v24, %s1647_s17  ;;  %p1566_p9 = scmp.lt.s32.totalorder %s1564_s29, %s1558_s9 }
 0x68a   : > { %p1567_p12 = por %p1566_p9, %p1565_p7 }
 0x68b   : > { %962 = vrot.lane.b32.xlu1 %v1885_v24, %s1648_s24  ;;  %v1057_v24 = vld [vmem:[#allocation7 + $0x10] sm:$0xff] }
 0x68c   : > { %v1366_v26 = vpack.c.bf16 %v1058_v25, %v1057_v24  ;;  %p1568_p2 = pnand %p1567_p12, %p1561_p3 }
 0x68e   : > { %1367 = vmatpush3.bf16.msra.mxu0 %v1366_v26 }
 0x6f2   : > { %v794_v7 = vpop.xlane.xlu0 %793 }
 0x6ff   : > { %v629_v8 = vpop.xlane.xlu0 %628 }
 0x700   : > { %1466 = vrcp.f32 %v629_v8 }
 0x701   : > { %1468 = vrcp.f32 %v794_v7 }
 0x703   : > { %v959_v9 = vpop.xlane.xlu1 %958  ;;  %v633_v11 = vpop.permute.xlu0 %632 }
 0x704   : > { %1321 = vmatpush3.msra.mxu1 %v633_v11  ;;  %1470 = vrcp.f32 %v959_v9 }
 0x705   : > { %1330 = vmatprep.subr.mxu1 %v1637_v13 }
 0x707   : > { %v798_v15 = vpop.permute.xlu1 %797 }
 0x70a   : > { %v1467_v12 = vpop.eup %1466 }
 0x70b   : > { %v631_v14 = vmul.f32 %v1467_v12, %v1463_v3  ;;  %v1469_v16 = vpop.eup %1468  ;;  %v963_v19 = vpop.permute.xlu1 %962 }
 0x70c   : > { %v796_v17 = vmul.f32 %v1469_v16, %v1461_v61 }
 0x70d   : > { %1323 = vmatmul.mubr.msk.f32.vlgmr.msra.gmra.mrb[6].mxu1 %vm381_vm2, %v631_v14 }
 0x70e   : > { %1331 = vmatpush3.msra.mxu1 %v798_v15  ;;  %1332 = vmatprep.mubr.msk.f32.mxu1 %vm1636_vm1, %v1637_v13  ;;  %v1471_v18 = vpop.eup %1470 }
 0x70f   : > { %1340 = vmatprep.subr.mxu1 %v1637_v13  ;;  %v961_v20 = vmul.f32 %v1471_v18, %v1465_v5 }
 0x711   : > { %1333 = vmatmul.mubr.msk.f32.vlgmr.msra.gmra.mrb[8].mxu1 %vm381_vm2, %v796_v17 }
 0x712   : > { %1341 = vmatpush3.msra.mxu1 %v963_v19  ;;  %1342 = vmatprep.mubr.msk.f32.mxu1 %vm1636_vm1, %v1637_v13 }
 0x715   : > { %1343 = vmatmul.mubr.msk.f32.vlgmr.msra.gmra.mrb[10].mxu1 %vm381_vm2, %v961_v20 }
 0x7e0   : > { %v704_v27 = vpop.f32.mrb[6].mxu1 }
 0x7e1   : > { %1039 = vrot.lane.b32.xlu1 %v704_v27, %s1649_s26  ;;  %v1324_v28 = vpop.f32.mrb[7].mxu1 }
 0x7e4   : > { %v869_v29 = vpop.f32.mrb[8].mxu1 }
 0x7e5   : > { %1043 = vrot.lane.b32.xlu0 %v869_v29, %s1650_s8  ;;  %v1334_v13 = vpop.f32.mrb[9].mxu1 }
 0x7e8   : > { %v1034_v30 = vpop.f32.mrb[10].mxu1 }
 0x7e9   : > { %1047 = vrot.lane.b32.xlu1 %v1034_v30, %s1651_s10  ;;  %v1344_v31 = vpop.f32.mrb[11].mxu1 }
 0x853   : > { %v1040_v32 = vpop.permute.xlu1 %1039 }
 0x854   : > { %v1050_v33 = vsel %vm381_vm2, %v1923_v49, %v1040_v32 }
 0x857   : > { %v1044_v10 = vpop.permute.xlu0 %1043 }
 0x858   : > { %v1052_v34 = vsel %vm1051_vm3, %v1050_v33, %v1044_v10 }
 0x85b   : > { %v1048_v35 = vpop.permute.xlu1 %1047 }
 0x85c   : > { %v1054_v36 = vsel %vm1053_vm4, %v1052_v34, %v1048_v35 }
 0x85d   : > { %1354 = vmatmul.mubr.msk.f32.vlgmr.msra.gmra.mrb[6].mxu0 %vm270_vm0, %v1054_v36 }
 0x930   : > { %v1128_v37 = vpop.f32.mrb[6].mxu0 }
 0x931   : > { %1132 = vst.msk [vmem:[%s268_s28] sm:$0xff] %vm270_vm0, %v1128_v37  ;;  %v1355_v38 = vpop.f32.mrb[7].mxu0 }
 0x932   : > { %1571 = shalt.err (!%p1568_p2)
}
 0x933   : > { %s1572_s12 = scalar_lea.hbm %s1952_s15, 128  ;;  %s1576_s26 = scalar_lea.hbm %s2002_s5, 256 }
 0x934   : > { %p1573_p13 = scmp.ne.s32.totalorder %s1952_s15, %s1572_s12  ;;  %p1577_p4 = scmp.lt.u32.totalorder %s1952_s15, %s2002_s5 }
 0x935   : > { %p1578_p5 = scmp.lt.u32.totalorder %s1576_s26, %s1572_s12  ;;  %p1580_p11 = scmp.lt.u32.totalorder %s1572_s12, %s1952_s15 }
 0x936   : > { %p1574_p6 = pnand %p1573_p13, %p2016_p0 }
 0x937   : > { %p1579_p8 = por %p1578_p5, %p1577_p4 }
 0x938   : > { %p1575_p10 = pneg %p1574_p6 }
 0x939   : > { %p1581_p1 = por %p1580_p11, %p1579_p8 }
 0x93b   : > { %p1582_p3 = pnand %p1581_p1, %p1575_p10 }
 0x93d   : > { %1585 = shalt.err (!%p1582_p3)
}
 0x93e   : > { %1378 = dma.vmem_to_hbm [thread:$0]  (%p2016_p0), %s1954_s7, 128, %s1952_s15, %s1134_s16  }
 0x93f PF: > { %s1159_s11 = sand.u32 1, %s1616_s18   ;;  %p2017_p7 = scmp.ne.s32.totalorder %s2007_s25, 0 }
 0x940   : > { %p2018_p9 = scmp.ge.s32.totalorder %s1628_s21, 2  ;;  %s1160_s28 = scalar_lea.sflag [#allocation4], %s1159_s11 }
 0x942   : > { %p1392_p12 = pnand %p2018_p9, %p2017_p7 }
 0x944   : > { %1611 = dma.done.wait (!%p1392_p12), %s1160_s28, 128  }
 0x945   : > { %1613 = vsyncadd (!%p1392_p12), %s1160_s28, 4294967168  ;;  %p19_p2 = scmp.ge.s32.totalorder %s1793_s14, 4   ;;  %s2019_s18 = smov %s1620_s19 }
 0x946   : > { %s2020_s19 = smov %s1624_s20  ;;  %s2021_s20 = smov %s1809_s27 }
 0x947   : > { %s2022_s21 = smov %s1793_s14  ;;  %21 = sbr.rel (!%p19_p2) target bundleno = 6 (0x6), region = 93 }
 0x94e   :  { %1165 = vsyncpa [#allocation3], 1 }
 0x94f   :  { %1167 = vsyncpa [#allocation3 + $0x1], 1 }
 0x950   :  { %1168 = vsyncpa [#allocation6], 1 }
 0x951   :  { %1169 = vsyncpa [#allocation4], 1 }
 0x952   :  { %1171 = vsyncpa [#allocation4 + $0x1], 1 }

</bundles_post_ra>
